<compile_context>
chip_gen: v5e
topology: v5e:2x2
jax: 0.10.0
libtpu: 0.0.40
codegen_flags: <defaults>
</compile_context>

<pallas_src>
import functools

import jax
import jax.numpy as jnp
from jax.experimental import pallas as pl
from jax.experimental.pallas import tpu as pltpu

NUM_SRC = 50                     # number of scattered elements
NUM_BINS = 32                    # scatter destination size == hidden size
OUT_COLS = 96                    # 32 (mm) + 24 (zeros) + 40 (zeros)
PAD_COLS = OUT_COLS - NUM_BINS   # 64 constant-zero tail columns


def repro_kernel(idx_ref, val_ref, w_ref, out_ref):
    # idx_ref: (1, NUM_SRC)        int32   -- scatter indices in [0, NUM_BINS)
    # val_ref: (NUM_SRC, 1)        float32 -- scatter source values (column)
    # w_ref  : (1, NUM_BINS)       float32 -- linear weight (row)
    # out_ref: (NUM_BINS, OUT_COLS) float32 -- full padded output

    # One-hot scatter matrix: onehot[k, i] = 1.0 iff idx[i] == k.  Out-of-range
    # or negative indices are silently dropped (matches the JAX reference;
    # PyTorch scatter_add would error on them).
    bins = jax.lax.broadcasted_iota(jnp.int32, (NUM_BINS, NUM_SRC), 0)   # (32, 50)
    onehot = jnp.where(bins == idx_ref[...], 1.0, 0.0)                   # (32, 50) f32

    # Fuse the outer product into the matmul:
    #   r[i, j]  = val[i] * w[j]                      (50, 32) VPU broadcast mul
    #   mm[k, j] = sum_i onehot[k, i] * r[i, j]       (32, 32) single MXU pass
    # which equals (scatter_add result)[k] * w[j].
    r = val_ref[...] * w_ref[...]                                        # (50, 32)
    mm = jnp.dot(onehot, r,
                 precision=jax.lax.Precision.HIGHEST,
                 preferred_element_type=jnp.float32)                     # (32, 32)

    # Emit the full padded output: zero everything once, then store the
    # non-trivial 32x32 block into the first 32 lanes.
    out_ref[...] = jnp.zeros_like(out_ref)
    out_ref[:, :NUM_BINS] = mm


@functools.partial(jax.jit, static_argnames=())
def repro_forward(values, indices, weight):
    """values: f32 [50, 1], indices: int [50], weight: f32 [32] -> f32 [32, 96]."""
    # int64 -> int32 cast is safe because valid indices are < 32.
    idx2d = indices.astype(jnp.int32).reshape(1, NUM_SRC)
    val2d = values.astype(jnp.float32).reshape(NUM_SRC, 1)
    w2d = weight.astype(jnp.float32).reshape(1, NUM_BINS)

    return pl.pallas_call(
        repro_kernel,
        out_shape=jax.ShapeDtypeStruct((NUM_BINS, OUT_COLS), jnp.float32),
        in_specs=[
            pl.BlockSpec(memory_space=pltpu.MemorySpace.VMEM),
            pl.BlockSpec(memory_space=pltpu.MemorySpace.VMEM),
            pl.BlockSpec(memory_space=pltpu.MemorySpace.VMEM),
        ],
        out_specs=pl.BlockSpec(memory_space=pltpu.MemorySpace.VMEM),
    )(idx2d, val2d, w2d)


def repro_reference(values, indices, weight):
    """Pure-JAX reference mirroring the PyTorch graph."""
    s = jnp.zeros((NUM_BINS,), jnp.float32).at[indices].add(values[:, 0])
    mm = s[:, None] * weight[None, :]
    return jnp.concatenate(
        [mm, jnp.zeros((NUM_BINS, PAD_COLS), jnp.float32)], axis=-1)


if __name__ == "__main__":
    key = jax.random.PRNGKey(0)
    k_val, k_idx, k_w = jax.random.split(key, 3)

    # Deterministic inputs / parameter (shapes implied by the module).
    values = jax.random.normal(k_val, (NUM_SRC, 1), dtype=jnp.float32)       # arg1_1
    indices = jax.random.randint(k_idx, (NUM_SRC,), 0, NUM_BINS, jnp.int32)  # arg2_1
    weight = jax.random.normal(k_w, (NUM_BINS,), dtype=jnp.float32)          # linear_weight

    out = repro_forward(values, indices, weight)
    jax.block_until_ready(out)

    ref = repro_reference(values, indices, weight)
    assert out.shape == (NUM_BINS, OUT_COLS)
    assert jnp.allclose(out, ref, atol=1e-5, rtol=1e-5)

    print("KERNEL_OK")
</pallas_src>

<mosaic_0001>
module attributes {stable_mosaic.version = 11 : i64} {
  func.func @repro_kernel(%arg0: memref<1x50xi32, #tpu.memory_space<vmem>>, %arg1: memref<50x1xf32, #tpu.memory_space<vmem>>, %arg2: memref<1x32xf32, #tpu.memory_space<vmem>>, %arg3: memref<32x96xf32, #tpu.memory_space<vmem>>) attributes {dimension_semantics = [], scalar_prefetch = 0 : i64, scratch_operands = 0 : i64, tpu.core_type = #tpu.core_type<tc>} {
    %0 = tpu.iota {dimensions = array<i32: 0>} : vector<32x50xi32>
    %c0 = arith.constant 0 : index
    %c0_0 = arith.constant 0 : index
    %1 = vector.load %arg0[%c0, %c0_0] : memref<1x50xi32, #tpu.memory_space<vmem>>, vector<1x50xi32>
    %2 = vector.broadcast %1 : vector<1x50xi32> to vector<32x50xi32>
    %3 = arith.cmpi eq, %0, %2 : vector<32x50xi32>
    %cst = arith.constant 1.000000e+00 : f32
    %cst_1 = arith.constant 0.000000e+00 : f32
    %4 = vector.broadcast %cst : f32 to vector<32x50xf32>
    %5 = vector.broadcast %cst_1 : f32 to vector<32x50xf32>
    %6 = arith.select %3, %4, %5 : vector<32x50xi1>, vector<32x50xf32>
    %c0_2 = arith.constant 0 : index
    %c0_3 = arith.constant 0 : index
    %7 = vector.load %arg1[%c0_2, %c0_3] : memref<50x1xf32, #tpu.memory_space<vmem>>, vector<50x1xf32>
    %c0_4 = arith.constant 0 : index
    %c0_5 = arith.constant 0 : index
    %8 = vector.load %arg2[%c0_4, %c0_5] : memref<1x32xf32, #tpu.memory_space<vmem>>, vector<1x32xf32>
    %9 = vector.broadcast %7 : vector<50x1xf32> to vector<50x32xf32>
    %10 = vector.broadcast %8 : vector<1x32xf32> to vector<50x32xf32>
    %11 = arith.mulf %9, %10 : vector<50x32xf32>
    %cst_6 = arith.constant dense<0.000000e+00> : vector<32x32xf32>
    %12 = tpu.matmul %6, %11, %cst_6 {dimension_numbers = #tpu.dot_dimension_numbers<[1], [0], [0], [1], [0, 0, 1, 1], [], []>, precision = #tpu.contract_precision<fp32>} : vector<32x50xf32>, vector<50x32xf32>, vector<32x32xf32> -> vector<32x32xf32>
    %cst_7 = arith.constant 0.000000e+00 : f32
    %13 = vector.broadcast %cst_7 : f32 to vector<32x96xf32>
    %c0_8 = arith.constant 0 : index
    %c0_9 = arith.constant 0 : index
    %14 = vector.load %arg3[%c0_8, %c0_9] : memref<32x96xf32, #tpu.memory_space<vmem>>, vector<32x96xf32>
    tpu.vector_store %arg3[%c0_8, %c0_9], %13 {strides = array<i32>} : memref<32x96xf32, #tpu.memory_space<vmem>>, vector<32x96xf32>,
    %c0_10 = arith.constant 0 : index
    %c0_11 = arith.constant 0 : index
    %15 = vector.load %arg3[%c0_10, %c0_11] : memref<32x96xf32, #tpu.memory_space<vmem>>, vector<32x32xf32>
    tpu.vector_store %arg3[%c0_10, %c0_11], %12 {strides = array<i32>} : memref<32x96xf32, #tpu.memory_space<vmem>>, vector<32x32xf32>,
    return
  }
}

</mosaic_0001>

<bundles_post_ra>
// kernel: repro_forward.1
= control target key start
LH: loop header
LB: loop body
LE: loop exit
PB: predicated region body
PF: predicated region fallthrough
CT: control target
= control target key end

     0   :  { %v507_v2 = vmov 0   ;;  %s716_s0 = inlined_call_operand.vmem [shape: s32[1,50], index: 0, kind: input, shape index: {}]   ;;  %s717_s1 = inlined_call_operand.vmem [shape: f32[50,1], index: 1, kind: input, shape index: {}]   ;;  %s718_s2 = inlined_call_operand.vmem [shape: f32[1,32], index: 2, kind: input, shape index: {}]   ;;  %s719_s3 = inlined_call_operand.hbm [shape: f32[32,96], index: 3, kind: output, shape index: {}]  }
   0x1   :  { %v36_v0 = vld [vmem:[%s717_s1 + $0x30] sm:$0x3]  ;;  %v34_v1 = vld [vmem:[%s717_s1 + $0x20] sm:$0xff]  ;;  %477 = vset.pattern.permute.xlu1 %v507_v2  ;;  %476 = vset.pattern.permute.xlu0 %v507_v2 }
   0x2   :  { %v32_v3 = vld [vmem:[%s717_s1 + $0x10] sm:$0xff]  ;;  %70 = vperm.xlu0 %476, %v36_v0   ;;  %60 = vperm.xlu1 %477, %v34_v1  }
   0x3   :  { %478 = vset.pattern.permute.xlu2 %v507_v2 }
   0x4   :  { %8 = vsyncpa [#allocation3], 0  ;;  %50 = vperm.xlu2 %478, %v32_v3   ;;  %v35_v4 = vld [vmem:[%s717_s1 + $0x28] sm:$0xff]  ;;  %v33_v5 = vld [vmem:[%s717_s1 + $0x18] sm:$0xff]  ;;  %v15_v8 = vlaneseq  ;;  %vm96_vm1 = vcmask 1041408   ;;  %v508_v18 = vmov 0.0  }
   0x5   :  { %v31_v6 = vld [vmem:[%s717_s1 + $0x8] sm:$0xff]  ;;  %v30_v7 = vld [vmem:[%s717_s1] sm:$0xff]  ;;  %vm83_vm2 = vcmask 408576   ;;  %vm417_vm6 = vcmask 785408   ;;  %vm422_vm7 = vcmask 261120   ;;  %s433_s4 = sshll.u32 %s719_s3, 4  ;;  %s434_s4 = int_to_ptr.hbm [resolvable:$true] %s433_s4 }
   0x6   :  { %v553_v9 = vshrl.u32 %v15_v8, 7  ;;  %v559_v12 = vld [vmem:[%s716_s0] ss:$0 sm:$0xff]  ;;  %418 = vst.msk [vmem:[#allocation2] sm:$0xff] %vm417_vm6, %v508_v18  ;;  %s509_s0 = smov [#allocation2]   ;;  %s510_s5 = smov 128  }
   0x7   :  { %v479_v13 = vld [vmem:[%s718_s2] ss:$0 sm:$0xff]  ;;  %419 = vst.msk [vmem:[#allocation2 + $0x8] sm:$0xff] %vm417_vm6, %v508_v18  ;;  %s431_s1 = sshll.u32 %s509_s0, 4  ;;  %s511_s6 = smov 8   ;;  %s432_s1 = int_to_ptr.vmem [resolvable:$true] %s431_s1 }
   0x8   :  { %v18_v11 = vadd.s32 16, %v553_v9  ;;  %v19_v22 = vadd.s32 24, %v553_v9  ;;  %vm22_vm4 = vcmp.eq.s32.totalorder %v553_v9, %v559_v12  ;;  %v17_v62 = vadd.s32 8, %v553_v9  ;;  %420 = vst.msk [vmem:[#allocation2 + $0x10] sm:$0xff] %vm417_vm6, %v508_v18 }
   0x9   :  { %v632_v59 = vsel %vm22_vm4, 1.0, %v508_v18  ;;  %421 = vst.msk [vmem:[#allocation2 + $0x18] sm:$0xff] %vm417_vm6, %v508_v18 }
   0xa   :  { %65 = vperm.xlu0 %476, %v35_v4   ;;  %55 = vperm.xlu1 %477, %v33_v5   ;;  %vm24_vm0 = vcmp.eq.s32.totalorder %v18_v11, %v559_v12  ;;  %vm25_vm3 = vcmp.eq.s32.totalorder %v19_v22, %v559_v12  ;;  %v85_v4 = vsel %vm83_vm2, %v632_v59, 0  ;;  %vm23_vm5 = vcmp.eq.s32.totalorder %v17_v62, %v559_v12 }
   0xb   :  { %v566_v19 = vsel %vm24_vm0, 1.0, %v508_v18  ;;  %v597_v40 = vsel %vm25_vm3, 1.0, %v508_v18  ;;  %v27_v12 = vsel %vm23_vm5, 1.0, %v508_v18 }
   0xc   :  { %45 = vperm.xlu2 %478, %v31_v6   ;;  %v91_v24 = vsel %vm83_vm2, %v566_v19, 0  ;;  %v94_v48 = vsel %vm83_vm2, %v597_v40, 0 }
   0xd   :  { %v581_v32 = vsub.f32 %v91_v24, %v91_v24  ;;  %v627_v56 = vsub.f32 %v94_v48, %v94_v48 }
   0xf   :  { %v141_v43 = vand.u32 4294901760, %v581_v32  ;;  %v149_v3 = vand.u32 4294901760, %v627_v56 }
  0x11   :  { %v142_v52 = vsub.f32 %v581_v32, %v141_v43  ;;  %v150_v11 = vsub.f32 %v627_v56, %v149_v3 }
  0x12   :  { %40 = vperm.xlu0 %476, %v30_v7  }
  0x13   :  { %v143_v2 = vand.u32 4294901760, %v142_v52 }
  0x5e   :  { %v51_v10 = vpop.permute.xlu2 %50 }
  0x5f   :  { %v78_v25 = vmul.f32 %v479_v13, %v51_v10  ;;  %v124_v10 = vsub.f32 %v85_v4, %v85_v4 }
  0x61   :  { %v584_v35 = vand.u32 4294901760, %v78_v25 }
  0x63   :  { %v609_v46 = vsub.f32 %v78_v25, %v584_v35 }
  0x65   :  { %v191_v58 = vand.u32 4294901760, %v609_v46 }
  0x66   :  { %v46_v23 = vpop.permute.xlu2 %45 }
  0x67   :  { %v77_v28 = vmul.f32 %v479_v13, %v46_v23  ;;  %v192_v6 = vsub.f32 %v609_v46, %v191_v58 }
  0x69   :  { %v599_v41 = vand.u32 4294901760, %v77_v28 }
  0x6b   :  { %v619_v50 = vsub.f32 %v77_v28, %v599_v41 }
  0x6d   :  { %v197_v0 = vand.u32 4294901760, %v619_v50 }
  0x6f   :  { %v198_v9 = vsub.f32 %v619_v50, %v197_v0 }
  0x74   :  { %v71_v14 = vpop.permute.xlu0 %70  ;;  %v61_v15 = vpop.permute.xlu1 %60 }
  0x75   :  { %v82_v16 = vmul.f32 %v479_v13, %v71_v14  ;;  %v80_v17 = vmul.f32 %v479_v13, %v61_v15  ;;  %v199_v15 = vand.u32 4294901760, %v198_v9 }
  0x77   :  { %v98_v20 = vsel %vm96_vm1, %v82_v16, 0  ;;  %v576_v27 = vand.u32 4294901760, %v80_v17  ;;  %v125_v16 = vand.u32 4294901760, %v124_v10 }
  0x78   :  { %v568_v21 = vand.u32 4294901760, %v98_v20 }
  0x79   :  { %v587_v36 = vsub.f32 %v80_v17, %v576_v27  ;;  %v151_v17 = vand.u32 4294901760, %v150_v11  ;;  %v126_v23 = vsub.f32 %v124_v10, %v125_v16 }
  0x7a   :  { %v574_v26 = vsub.f32 %v98_v20, %v568_v21  ;;  %110 = vmatpush.msra.mxu0 %v568_v21  ;;  %457 = vmatpush.msra.mxu2 %v568_v21  ;;  %v88_v20 = vsel %vm83_vm2, %v27_v12, 0 }
  0x7b   :  { %v179_v47 = vand.u32 4294901760, %v587_v36  ;;  %v132_v24 = vsub.f32 %v88_v20, %v88_v20  ;;  %v127_v25 = vand.u32 4294901760, %v126_v23 }
  0x7c   :  { %v66_v29 = vpop.permute.xlu0 %65  ;;  %v56_v30 = vpop.permute.xlu1 %55  ;;  %v167_v31 = vand.u32 4294901760, %v574_v26 }
  0x7d   :  { %v81_v33 = vmul.f32 %v479_v13, %v66_v29  ;;  %v79_v34 = vmul.f32 %v479_v13, %v56_v30  ;;  %v180_v57 = vsub.f32 %v587_v36, %v179_v47 }
  0x7e   :  { %v168_v37 = vsub.f32 %v574_v26, %v167_v31 }
  0x7f   :  { %v592_v38 = vand.u32 4294901760, %v81_v33  ;;  %v594_v39 = vand.u32 4294901760, %v79_v34  ;;  %v181_v5 = vand.u32 4294901760, %v180_v57 }
  0x80   :  { %v169_v42 = vand.u32 4294901760, %v168_v37 }
  0x81   :  { %v172_v44 = vsub.f32 %v81_v33, %v592_v38  ;;  %v604_v45 = vsub.f32 %v79_v34, %v594_v39  ;;  %112 = vmatpush.msra.mxu0 %v592_v38  ;;  %458 = vmatpush.msra.mxu2 %v592_v38 }
  0x82   :  { %170 = vmatpush.msra.mxu1 %v169_v42  ;;  %464 = vmatpush.msra.mxu3 %v169_v42 }
  0x83   :  { %114 = vmatpush.msra.mxu0 %v576_v27  ;;  %459 = vmatpush.msra.mxu2 %v576_v27  ;;  %v173_v49 = vand.u32 4294901760, %v172_v44  ;;  %v185_v53 = vand.u32 4294901760, %v604_v45 }
  0x84   :  { %v41_v51 = vpop.permute.xlu0 %40 }
  0x85   :  { %v76_v54 = vmul.f32 %v479_v13, %v41_v51  ;;  %116 = vmatpush.msra.mxu0 %v594_v39  ;;  %460 = vmatpush.msra.mxu2 %v594_v39  ;;  %v174_v55 = vsub.f32 %v172_v44, %v173_v49  ;;  %v186_v63 = vsub.f32 %v604_v45, %v185_v53  ;;  %v193_v13 = vand.u32 4294901760, %v192_v6 }
  0x87   :  { %v634_v60 = vand.u32 4294901760, %v76_v54  ;;  %118 = vmatpush.msra.mxu0 %v584_v35  ;;  %461 = vmatpush.msra.mxu2 %v584_v35  ;;  %v175_v61 = vand.u32 4294901760, %v174_v55  ;;  %v187_v8 = vand.u32 4294901760, %v186_v63 }
  0x89   :  { %v202_v1 = vsub.f32 %v76_v54, %v634_v60  ;;  %120 = vmatpush.msra.mxu0 %v599_v41  ;;  %462 = vmatpush.msra.mxu2 %v599_v41 }
  0x8a   :  { %176 = vmatpush.msra.mxu1 %v175_v61  ;;  %465 = vmatpush.msra.mxu3 %v175_v61 }
  0x8b   :  { %122 = vmatpush.msra.mxu0 %v634_v60  ;;  %463 = vmatpush.msra.mxu2 %v634_v60  ;;  %v203_v7 = vand.u32 4294901760, %v202_v1 }
  0x8c   :  { %182 = vmatpush.msra.mxu1 %v181_v5  ;;  %466 = vmatpush.msra.mxu3 %v181_v5 }
  0x8d   :  { %144 = vmatmul.f32.vlgmr.msra.gmra.mxu2 %v143_v2  ;;  %335 = vmatpush.msrb.mxu0 %v167_v31  ;;  %v204_v14 = vsub.f32 %v202_v1, %v203_v7 }
  0x8e   :  { %235 = vmatpush.msrb.mxu2 %v574_v26  ;;  %188 = vmatpush.msra.mxu1 %v187_v8  ;;  %v133_v26 = vand.u32 4294901760, %v132_v24 }
  0x8f   :  { %467 = vmatpush.msra.mxu3 %v187_v8  ;;  %339 = vmatpush.msrb.mxu0 %v173_v49  ;;  %v205_v22 = vand.u32 4294901760, %v204_v14 }
  0x90   :  { %238 = vmatpush.msrb.mxu2 %v172_v44  ;;  %194 = vmatpush.msra.mxu1 %v193_v13  ;;  %v134_v28 = vsub.f32 %v132_v24, %v133_v26 }
  0x91   :  { %468 = vmatpush.msra.mxu3 %v193_v13  ;;  %343 = vmatpush.msrb.mxu0 %v179_v47 }
  0x92   :  { %241 = vmatpush.msrb.mxu2 %v587_v36  ;;  %200 = vmatpush.msra.mxu1 %v199_v15 }
  0x93   :  { %469 = vmatpush.msra.mxu3 %v199_v15  ;;  %347 = vmatpush.msrb.mxu0 %v185_v53 }
  0x94   :  { %244 = vmatpush.msrb.mxu2 %v604_v45  ;;  %206 = vmatpush.msra.mxu1 %v205_v22 }
  0x95   :  { %470 = vmatpush.msra.mxu3 %v205_v22  ;;  %152 = vmatmul.f32.gmra.mxu2 %v151_v17 }
  0x96   :  { %447 = vmatmul.msk.f32.vlgmr.msra.gmra.mxu3 %vm83_vm2, %v566_v19  ;;  %247 = vmatpush.msrb.mxu2 %v609_v46 }
  0x97   :  { %285 = vmatpush.msrb.mxu3 %v568_v21  ;;  %351 = vmatpush.msrb.mxu0 %v191_v58 }
  0x98   :  { %387 = vmatpush.msrb.mxu1 %v568_v21  ;;  %250 = vmatpush.msrb.mxu2 %v619_v50  ;;  %v135_v21 = vand.u32 4294901760, %v134_v28 }
  0x99   :  { %287 = vmatpush.msrb.mxu3 %v592_v38  ;;  %355 = vmatpush.msrb.mxu0 %v197_v0 }
  0x9a   :  { %389 = vmatpush.msrb.mxu1 %v592_v38  ;;  %253 = vmatpush.msrb.mxu2 %v202_v1 }
  0x9b   :  { %289 = vmatpush.msrb.mxu3 %v576_v27  ;;  %359 = vmatpush.msrb.mxu0 %v203_v7 }
  0x9c   :  { %391 = vmatpush.msrb.mxu1 %v576_v27  ;;  %128 = vmatmul.f32.vlgmr.msra.gmra.mxu0 %v127_v25 }
  0x9d   :  { %291 = vmatpush.msrb.mxu3 %v594_v39  ;;  %445 = vmatmul.msk.f32.vlgmr.msra.gmra.mxu1 %vm83_vm2, %v632_v59 }
  0x9e   :  { %393 = vmatpush.msrb.mxu1 %v594_v39  ;;  %448 = vmatmul.msk.f32.gmra.mxu3 %vm83_vm2, %v597_v40 }
  0x9f   :  { %256 = vmatmul.f32.vlgmr.msrb.gmra.mxu2 %v124_v10  ;;  %293 = vmatpush.msrb.mxu3 %v584_v35 }
  0xa0   :  { %395 = vmatpush.msrb.mxu1 %v584_v35 }
  0xa1   :  { %295 = vmatpush.msrb.mxu3 %v599_v41 }
  0xa2   :  { %397 = vmatpush.msrb.mxu1 %v599_v41 }
  0xa3   :  { %297 = vmatpush.msrb.mxu3 %v634_v60 }
  0xa4   :  { %399 = vmatpush.msrb.mxu1 %v634_v60  ;;  %136 = vmatmul.f32.gmra.mxu0 %v135_v21 }
  0xa5   :  { %446 = vmatmul.msk.f32.gmra.mxu1 %vm83_vm2, %v27_v12 }
  0xa6   :  { %301 = vmatmul.f32.vlgmr.msrb.gmra.mxu3 %v125_v16 }
  0xa7   :  { %261 = vmatmul.f32.gmra.mxu2 %v132_v24 }
  0xac   :  { %449 = vmatmul.msk.f32.vlgmr.msrb.gmra.mxu0 %vm83_vm2, %v632_v59 }
  0xad   :  { %453 = vmatmul.msk.f32.vlgmr.msrb.gmra.mxu1 %vm83_vm2, %v632_v59 }
  0xae   :  { %307 = vmatmul.f32.gmra.mxu3 %v133_v26 }
  0xaf   :  { %266 = vmatmul.f32.gmra.mxu2 %v581_v32 }
  0xb4   :  { %450 = vmatmul.msk.f32.gmra.mxu0 %vm83_vm2, %v27_v12 }
  0xb5   :  { %454 = vmatmul.msk.f32.gmra.mxu1 %vm83_vm2, %v27_v12 }
  0xb6   :  { %313 = vmatmul.f32.gmra.mxu3 %v141_v43 }
  0xb7   :  { %271 = vmatmul.f32.gmra.mxu2 %v627_v56 }
  0xbc   :  { %451 = vmatmul.msk.f32.gmra.mxu0 %vm83_vm2, %v566_v19 }
  0xbd   :  { %455 = vmatmul.msk.f32.gmra.mxu1 %vm83_vm2, %v566_v19 }
  0xbe   :  { %319 = vmatmul.f32.gmra.mxu3 %v149_v3 }
  0xc4   :  { %452 = vmatmul.msk.f32.gmra.mxu0 %vm83_vm2, %v597_v40 }
  0xc5   :  { %456 = vmatmul.msk.f32.gmra.mxu1 %vm83_vm2, %v597_v40 }
 0x110   :  { %v145_v27 = vpop.f32.mrf.mxu2 }
 0x118   :  { %v153_v19 = vpop.f32.mrf.mxu2 }
 0x119   :  { %v217_v29 = vpop.f32.mrf.mxu3  ;;  %v129_v30 = vpop.f32.mrf.mxu0 }
 0x11a   :  { %v209_v31 = vpop.f32.mrf.mxu1  ;;  %v218_v52 = vadd.f32 %v217_v29, %v145_v27 }
 0x11b   :  { %v210_v36 = vadd.f32 %v209_v31, %v129_v30 }
 0x121   :  { %v221_v32 = vpop.f32.mrf.mxu3  ;;  %v137_v33 = vpop.f32.mrf.mxu0 }
 0x122   :  { %v257_v34 = vpop.f32.mrf.mxu2  ;;  %v213_v35 = vpop.f32.mrf.mxu1  ;;  %v222_v61 = vadd.f32 %v221_v32, %v153_v19 }
 0x123   :  { %v258_v37 = vadd.f32 %v257_v34, %v210_v36  ;;  %v214_v44 = vadd.f32 %v213_v35, %v137_v33 }
 0x129   :  { %v302_v38 = vpop.f32.mrf.mxu3  ;;  %v362_v39 = vpop.f32.mrf.mxu0 }
 0x12a   :  { %v262_v40 = vpop.f32.mrf.mxu2  ;;  %v303_v41 = vadd.f32 %v302_v38, %v258_v37  ;;  %v402_v42 = vpop.f32.mrf.mxu1 }
 0x12b   :  { %v263_v18 = vadd.f32 %v262_v40, %v214_v44 }
 0x12c   :  { %v363_v43 = vadd.f32 %v362_v39, %v303_v41 }
 0x12e   :  { %v403_v45 = vadd.f32 %v402_v42, %v363_v43 }
 0x130   :  { %423 = vst.msk [vmem:[#allocation2] sm:$0xff] %vm422_vm7, %v403_v45 }
 0x131   :  { %v308_v46 = vpop.f32.mrf.mxu3  ;;  %v366_v47 = vpop.f32.mrf.mxu0 }
 0x132   :  { %v309_v48 = vadd.f32 %v308_v46, %v263_v18  ;;  %v406_v49 = vpop.f32.mrf.mxu1  ;;  %v267_v50 = vpop.f32.mrf.mxu2 }
 0x133   :  { %v268_v54 = vadd.f32 %v267_v50, %v218_v52 }
 0x134   :  { %v367_v51 = vadd.f32 %v366_v47, %v309_v48 }
 0x136   :  { %v407_v53 = vadd.f32 %v406_v49, %v367_v51 }
 0x138   :  { %424 = vst.msk [vmem:[#allocation2 + $0x8] sm:$0xff] %vm422_vm7, %v407_v53 }
 0x139   :  { %v314_v55 = vpop.f32.mrf.mxu3  ;;  %v370_v56 = vpop.f32.mrf.mxu0 }
 0x13a   :  { %v315_v57 = vadd.f32 %v314_v55, %v268_v54  ;;  %v410_v58 = vpop.f32.mrf.mxu1  ;;  %v272_v60 = vpop.f32.mrf.mxu2 }
 0x13b   :  { %v273_v63 = vadd.f32 %v272_v60, %v222_v61 }
 0x13c   :  { %v371_v59 = vadd.f32 %v370_v56, %v315_v57 }
 0x13e   :  { %v411_v62 = vadd.f32 %v410_v58, %v371_v59 }
 0x140   :  { %425 = vst.msk [vmem:[#allocation2 + $0x10] sm:$0xff] %vm422_vm7, %v411_v62 }
 0x141   :  { %v320_v0 = vpop.f32.mrf.mxu3  ;;  %v374_v1 = vpop.f32.mrf.mxu0 }
 0x142   :  { %v321_v2 = vadd.f32 %v320_v0, %v273_v63  ;;  %v414_v3 = vpop.f32.mrf.mxu1 }
 0x144   :  { %v375_v4 = vadd.f32 %v374_v1, %v321_v2 }
 0x146   :  { %v415_v5 = vadd.f32 %v414_v3, %v375_v4 }
 0x148   :  { %426 = vst.msk [vmem:[#allocation2 + $0x18] sm:$0xff] %vm422_vm7, %v415_v5 }
 0x149   :  { %439 = dma.vmem_to_hbm [thread:$0]  %s432_s1, 512, %s434_s4, [#allocation3], %s510_s5, %s510_s5, %s511_s6  }
 0x14a   :  { %505 = dma.done.wait [#allocation3], 512  }
 0x14b   :  { %506 = vsyncadd [#allocation3], 4294966784 }
 0x14c   :  { %444 = vsyncpa [#allocation3], 1 }

</bundles_post_ra>
